<compile_context>
chip_gen: v6e
topology: v6e:2x2x1
jax: 0.10.0
libtpu: 0.0.40
codegen_flags: <defaults>
</compile_context>

<pallas_src>
import jax
import jax.numpy as jnp
from jax.experimental import pallas as pl
from jax.experimental.pallas import tpu as pltpu

OBS_DIM = 8          # observation_space (environment-dependent; small synthetic)
ACT_H1 = 64
ACT_H2 = 64
N_ACTIONS = 5
CRI_H = 128

LANE = 128           # fused layer-2 output width
OUT_W = 8            # narrow merged output slab width (5 policy + 1 value + pad)
SUBLANE = 8
BATCH_TILE = 2048    # max batch rows per grid step
SPLIT_B = 1024       # batches >= this get >=2 grid steps (v7x dual-TensorCore)
NEG_INF = -1e30      # masks non-action lanes before softmax


def _round_up(n, m):
    return ((n + m - 1) // m) * m


def net_kernel(x_ref,
               w1_ref, b1_ref,   # fused input layer:        (OBS, 192), (1, 192)
               w2_ref, b2_ref,   # fused hidden+value layer: (192, 128), (1, 128)
               w3_ref, b3_ref,   # fused output layer:       (128, 8),   (1, 8)
               out_ref):
    # bf16 operands for the MXU, f32 accumulation and activations.
    x = x_ref[...].astype(jnp.bfloat16)                       # (TB, OBS)

    # Fused first layer: cols 0:128 = critic hidden, cols 128:192 = actor h1.
    h1 = jnp.tanh(
        jnp.dot(x, w1_ref[...], preferred_element_type=jnp.float32)
        + b1_ref[...])                                        # (TB, 192) f32

    # Fused layer 2: cols 0:64 = actor hidden pre-activation, col 64 = value,
    # cols 65:128 = 0 (zero weights / zero bias).
    z = (jnp.dot(h1.astype(jnp.bfloat16), w2_ref[...],
                 preferred_element_type=jnp.float32)
         + b2_ref[...])                                       # (TB, 128) f32
    lane = jax.lax.broadcasted_iota(jnp.int32, z.shape, 1)
    h2 = jnp.where(lane < ACT_H2, jnp.tanh(z), z)             # tanh actor cols only

    # Fused layer 3: cols 0:5 = actor logits, col 5 = value pass-through (weight
    # 1.0 in row 64), cols 6:8 = 0.  Narrow N keeps the output slab lane-dense.
    y = (jnp.dot(h2.astype(jnp.bfloat16), w3_ref[...],
                 preferred_element_type=jnp.float32)
         + b3_ref[...])                                       # (TB, 8) f32

    lane8 = jax.lax.broadcasted_iota(jnp.int32, y.shape, 1)
    is_logit = lane8 < N_ACTIONS
    logits = jnp.where(is_logit, y, NEG_INF)
    m = jnp.max(logits, axis=-1, keepdims=True)
    e = jnp.exp(logits - m)
    probs = e / jnp.sum(e, axis=-1, keepdims=True)            # exact normalization

    # lanes 0:5 = softmax policy, lane 5 = value, lanes 6:8 = 0
    out_ref[...] = jnp.where(lane8 == N_ACTIONS, y, probs)


def pack_params(params):
    """Fuse / pad the torch-layout params into the 6 kernel operands."""
    wa1, ba1, wa2, ba2, wa3, ba3, wc1, bc1, wc2, bc2 = params

    # Fused input layer: critic first (tile-aligned), actor second.
    w1 = jnp.concatenate([wc1, wa1], axis=1).astype(jnp.bfloat16)      # (8, 192)
    b1 = jnp.concatenate([bc1, ba1], axis=1).astype(jnp.float32)       # (1, 192)

    # Fused layer 2: actor_hidden + critic_output in one (192, 128) weight.
    w2 = jnp.zeros((CRI_H + ACT_H1, LANE), jnp.float32)
    w2 = w2.at[CRI_H:, :ACT_H2].set(wa2)                  # actor hidden (64, 64)
    w2 = w2.at[:CRI_H, ACT_H2:ACT_H2 + 1].set(wc2)        # critic value column
    w2 = w2.astype(jnp.bfloat16)                                       # (192, 128)
    b2 = jnp.zeros((1, LANE), jnp.float32)
    b2 = b2.at[:, :ACT_H2].set(ba2)
    b2 = b2.at[:, ACT_H2:ACT_H2 + 1].set(bc2)                          # (1, 128)

    # Fused layer 3: actor_output logits + value pass-through, narrow N = 8.
    w3 = jnp.zeros((LANE, OUT_W), jnp.float32)
    w3 = w3.at[:ACT_H2, :N_ACTIONS].set(wa3)              # actor output (64, 5)
    w3 = w3.at[ACT_H2, N_ACTIONS].set(1.0)                # value pass-through
    w3 = w3.astype(jnp.bfloat16)                                       # (128, 8)
    b3 = jnp.zeros((1, OUT_W), jnp.float32)
    b3 = b3.at[:, :N_ACTIONS].set(ba3)                                 # (1, 8)

    return (w1, b1, w2, b2, w3, b3)


@jax.jit
def net_forward(x, packed):
    """x: (B, OBS_DIM) -> (policy (B, N_ACTIONS), values (B, 1))."""
    x = x.astype(jnp.float32)
    B = x.shape[0]

    # Tile selection: minimize padding, keep >=2 tiles for large B (v7x 2 TCs).
    n_tiles = max(-(-B // BATCH_TILE), 2 if B >= SPLIT_B else 1)
    tb = _round_up(-(-B // n_tiles), SUBLANE)
    bp = tb * n_tiles
    if bp != B:
        x = jnp.pad(x, ((0, bp - B), (0, 0)))

    x_spec = pl.BlockSpec((tb, OBS_DIM), lambda i: (i, 0))
    out_spec = pl.BlockSpec((tb, OUT_W), lambda i: (i, 0))
    # Constant index_maps -> weights stay VMEM-resident across grid steps.
    w_specs = [pl.BlockSpec(p.shape, lambda i: (0, 0)) for p in packed]

    out = pl.pallas_call(
        net_kernel,
        grid=(n_tiles,),
        in_specs=[x_spec] + w_specs,
        out_specs=out_spec,
        out_shape=jax.ShapeDtypeStruct((bp, OUT_W), jnp.float32),
        compiler_params=pltpu.CompilerParams(
            dimension_semantics=("parallel",),
            vmem_limit_bytes=32 * 1024 * 1024),
    )(x, *packed)

    return out[:B, :N_ACTIONS], out[:B, N_ACTIONS:N_ACTIONS + 1]


def init_params(key):
    """Deterministic synthetic init matching nn.Linear shapes (stored (in, out))."""
    ks = jax.random.split(key, 10)

    def lin(kw, kb, fan_in, fan_out):
        bound = 1.0 / jnp.sqrt(fan_in)
        w = jax.random.uniform(kw, (fan_in, fan_out), jnp.float32, -bound, bound)
        b = jax.random.uniform(kb, (1, fan_out), jnp.float32, -bound, bound)
        return w, b

    wa1, ba1 = lin(ks[0], ks[1], OBS_DIM, ACT_H1)     # actor_input
    wa2, ba2 = lin(ks[2], ks[3], ACT_H1, ACT_H2)      # actor_hidden
    wa3, ba3 = lin(ks[4], ks[5], ACT_H2, N_ACTIONS)   # actor_output
    wc1, bc1 = lin(ks[6], ks[7], OBS_DIM, CRI_H)      # critic_input
    wc2, bc2 = lin(ks[8], ks[9], CRI_H, 1)            # critic_output
    return (wa1, ba1, wa2, ba2, wa3, ba3, wc1, bc1, wc2, bc2)


def net_reference(x, params):
    """Pure-JAX f32 reference mirroring the torch forward."""
    wa1, ba1, wa2, ba2, wa3, ba3, wc1, bc1, wc2, bc2 = params
    h1 = jnp.tanh(x @ wa1 + ba1)
    h2 = jnp.tanh(h1 @ wa2 + ba2)
    policy = jax.nn.softmax(h2 @ wa3 + ba3, axis=-1)
    hc = jnp.tanh(x @ wc1 + bc1)
    values = hc @ wc2 + bc2
    return policy, values


if __name__ == "__main__":
    key = jax.random.PRNGKey(0)
    k_x, k_x2, k_p = jax.random.split(key, 3)

    params = init_params(k_p)
    packed = pack_params(params)

    # Small demo batch (matches the module's per-step usage).
    B = 2
    x = jax.random.normal(k_x, (B, OBS_DIM), jnp.float32)
    policy, values = net_forward(x, packed)
    jax.block_until_ready((policy, values))

    assert policy.shape == (B, N_ACTIONS)
    assert values.shape == (B, 1)
    assert jnp.allclose(jnp.sum(policy, axis=-1), 1.0, atol=1e-3)

    ref_policy, ref_values = net_reference(x, params)
    assert jnp.allclose(policy, ref_policy, atol=2e-2), float(
        jnp.max(jnp.abs(policy - ref_policy)))
    assert jnp.allclose(values, ref_values, atol=2e-2), float(
        jnp.max(jnp.abs(values - ref_values)))

    # Larger batch exercises the padding / multi-tile (dual-TC) path.
    B2 = 600
    x2 = jax.random.normal(k_x2, (B2, OBS_DIM), jnp.float32)
    policy2, values2 = net_forward(x2, packed)
    jax.block_until_ready((policy2, values2))
    ref_policy2, ref_values2 = net_reference(x2, params)
    assert policy2.shape == (B2, N_ACTIONS) and values2.shape == (B2, 1)
    assert jnp.allclose(jnp.sum(policy2, axis=-1), 1.0, atol=1e-3)
    assert jnp.allclose(policy2, ref_policy2, atol=2e-2)
    assert jnp.allclose(values2, ref_values2, atol=2e-2)

    print("KERNEL_OK")
</pallas_src>

<mosaic_0001>
module attributes {stable_mosaic.version = 11 : i64} {
  func.func @net_kernel(%arg0: i32, %arg1: memref<8x8xf32, #tpu.memory_space<vmem>>, %arg2: memref<8x192xbf16, #tpu.memory_space<vmem>>, %arg3: memref<1x192xf32, #tpu.memory_space<vmem>>, %arg4: memref<192x128xbf16, #tpu.memory_space<vmem>>, %arg5: memref<1x128xf32, #tpu.memory_space<vmem>>, %arg6: memref<128x8xbf16, #tpu.memory_space<vmem>>, %arg7: memref<1x8xf32, #tpu.memory_space<vmem>>, %arg8: memref<8x8xf32, #tpu.memory_space<vmem>>) attributes {dimension_semantics = [#tpu.dimension_semantics<parallel>], iteration_bounds = array<i64: 1>, scalar_prefetch = 0 : i64, scratch_operands = 0 : i64, tpu.core_type = #tpu.core_type<tc>, window_params = [{transform_indices = @transform_0, window_bounds = array<i64: 8, 8>}, {pipeline_mode = #tpu.pipeline_mode<synchronous>, transform_indices = @transform_1, window_bounds = array<i64: 8, 192>}, {pipeline_mode = #tpu.pipeline_mode<synchronous>, transform_indices = @transform_2, window_bounds = array<i64: 1, 192>}, {pipeline_mode = #tpu.pipeline_mode<synchronous>, transform_indices = @transform_3, window_bounds = array<i64: 192, 128>}, {pipeline_mode = #tpu.pipeline_mode<synchronous>, transform_indices = @transform_4, window_bounds = array<i64: 1, 128>}, {pipeline_mode = #tpu.pipeline_mode<synchronous>, transform_indices = @transform_5, window_bounds = array<i64: 128, 8>}, {pipeline_mode = #tpu.pipeline_mode<synchronous>, transform_indices = @transform_6, window_bounds = array<i64: 1, 8>}, {transform_indices = @transform_7, window_bounds = array<i64: 8, 8>}]} {
    %c0 = arith.constant 0 : index
    %c0_0 = arith.constant 0 : index
    %0 = vector.load %arg1[%c0, %c0_0] : memref<8x8xf32, #tpu.memory_space<vmem>>, vector<8x8xf32>
    %1 = arith.truncf %0 : vector<8x8xf32> to vector<8x8xbf16>
    %c0_1 = arith.constant 0 : index
    %c0_2 = arith.constant 0 : index
    %2 = vector.load %arg2[%c0_1, %c0_2] : memref<8x192xbf16, #tpu.memory_space<vmem>>, vector<8x192xbf16>
    %cst = arith.constant dense<0.000000e+00> : vector<8x192xf32>
    %3 = tpu.matmul %1, %2, %cst {dimension_numbers = #tpu.dot_dimension_numbers<[1], [0], [0], [1], [0, 0, 1, 1], [], []>} : vector<8x8xbf16>, vector<8x192xbf16>, vector<8x192xf32> -> vector<8x192xf32>
    %c0_3 = arith.constant 0 : index
    %c0_4 = arith.constant 0 : index
    %4 = vector.load %arg3[%c0_3, %c0_4] : memref<1x192xf32, #tpu.memory_space<vmem>>, vector<1x192xf32>
    %5 = vector.broadcast %4 : vector<1x192xf32> to vector<8x192xf32>
    %6 = arith.addf %3, %5 : vector<8x192xf32>
    %7 = math.tanh %6 : vector<8x192xf32>
    %8 = arith.truncf %7 : vector<8x192xf32> to vector<8x192xbf16>
    %c0_5 = arith.constant 0 : index
    %c0_6 = arith.constant 0 : index
    %9 = vector.load %arg4[%c0_5, %c0_6] : memref<192x128xbf16, #tpu.memory_space<vmem>>, vector<192x128xbf16>
    %cst_7 = arith.constant dense<0.000000e+00> : vector<8x128xf32>
    %10 = tpu.matmul %8, %9, %cst_7 {dimension_numbers = #tpu.dot_dimension_numbers<[1], [0], [0], [1], [0, 0, 1, 1], [], []>} : vector<8x192xbf16>, vector<192x128xbf16>, vector<8x128xf32> -> vector<8x128xf32>
    %c0_8 = arith.constant 0 : index
    %c0_9 = arith.constant 0 : index
    %11 = vector.load %arg5[%c0_8, %c0_9] : memref<1x128xf32, #tpu.memory_space<vmem>>, vector<1x128xf32>
    %12 = vector.broadcast %11 : vector<1x128xf32> to vector<8x128xf32>
    %13 = arith.addf %10, %12 : vector<8x128xf32>
    %14 = tpu.iota {dimensions = array<i32: 1>} : vector<8x128xi32>
    %c64_i32 = arith.constant 64 : i32
    %15 = vector.broadcast %c64_i32 : i32 to vector<8x128xi32>
    %16 = arith.cmpi slt, %14, %15 : vector<8x128xi32>
    %17 = math.tanh %13 : vector<8x128xf32>
    %18 = arith.select %16, %17, %13 : vector<8x128xi1>, vector<8x128xf32>
    %19 = arith.truncf %18 : vector<8x128xf32> to vector<8x128xbf16>
    %c0_10 = arith.constant 0 : index
    %c0_11 = arith.constant 0 : index
    %20 = vector.load %arg6[%c0_10, %c0_11] : memref<128x8xbf16, #tpu.memory_space<vmem>>, vector<128x8xbf16>
    %cst_12 = arith.constant dense<0.000000e+00> : vector<8x8xf32>
    %21 = tpu.matmul %19, %20, %cst_12 {dimension_numbers = #tpu.dot_dimension_numbers<[1], [0], [0], [1], [0, 0, 1, 1], [], []>} : vector<8x128xbf16>, vector<128x8xbf16>, vector<8x8xf32> -> vector<8x8xf32>
    %c0_13 = arith.constant 0 : index
    %c0_14 = arith.constant 0 : index
    %22 = vector.load %arg7[%c0_13, %c0_14] : memref<1x8xf32, #tpu.memory_space<vmem>>, vector<1x8xf32>
    %23 = vector.broadcast %22 : vector<1x8xf32> to vector<8x8xf32>
    %24 = arith.addf %21, %23 : vector<8x8xf32>
    %25 = tpu.iota {dimensions = array<i32: 1>} : vector<8x8xi32>
    %c5_i32 = arith.constant 5 : i32
    %26 = vector.broadcast %c5_i32 : i32 to vector<8x8xi32>
    %27 = arith.cmpi slt, %25, %26 : vector<8x8xi32>
    %cst_15 = arith.constant -1.000000e+30 : f32
    %28 = vector.broadcast %cst_15 : f32 to vector<8x8xf32>
    %29 = arith.select %27, %24, %28 : vector<8x8xi1>, vector<8x8xf32>
    %cst_16 = arith.constant dense<0xFF800000> : vector<8xf32>
    %30 = vector.multi_reduction <maximumf>, %29, %cst_16 [1] : vector<8x8xf32> to vector<8xf32>
    %31 = vector.shape_cast %30 : vector<8xf32> to vector<8x1xf32>
    %32 = vector.broadcast %31 : vector<8x1xf32> to vector<8x8xf32>
    %33 = arith.subf %29, %32 : vector<8x8xf32>
    %34 = math.exp %33 : vector<8x8xf32>
    %cst_17 = arith.constant dense<0.000000e+00> : vector<8xf32>
    %35 = vector.multi_reduction <add>, %34, %cst_17 [1] : vector<8x8xf32> to vector<8xf32>
    %36 = vector.shape_cast %35 : vector<8xf32> to vector<8x1xf32>
    %37 = vector.broadcast %36 : vector<8x1xf32> to vector<8x8xf32>
    %38 = arith.divf %34, %37 : vector<8x8xf32>
    %c5_i32_18 = arith.constant 5 : i32
    %39 = vector.broadcast %c5_i32_18 : i32 to vector<8x8xi32>
    %40 = arith.cmpi eq, %25, %39 : vector<8x8xi32>
    %41 = arith.select %40, %24, %38 : vector<8x8xi1>, vector<8x8xf32>
    %c0_19 = arith.constant 0 : index
    %c0_20 = arith.constant 0 : index
    %42 = vector.load %arg8[%c0_19, %c0_20] : memref<8x8xf32, #tpu.memory_space<vmem>>, vector<8x8xf32>
    tpu.vector_store %arg8[%c0_19, %c0_20], %41 {strides = array<i32>} : memref<8x8xf32, #tpu.memory_space<vmem>>, vector<8x8xf32>,
    return
  }
  func.func @transform_0(%arg0: i32) -> (i32, i32) {
    %c0_i32 = arith.constant 0 : i32
    %c0_i32_0 = arith.constant 0 : i32
    return %arg0, %c0_i32 : i32, i32
  }
  func.func @transform_1(%arg0: i32) -> (i32, i32) {
    %c0_i32 = arith.constant 0 : i32
    %c0_i32_0 = arith.constant 0 : i32
    %c0_i32_1 = arith.constant 0 : i32
    return %c0_i32, %c0_i32_0 : i32, i32
  }
  func.func @transform_2(%arg0: i32) -> (i32, i32) {
    %c0_i32 = arith.constant 0 : i32
    %c0_i32_0 = arith.constant 0 : i32
    %c0_i32_1 = arith.constant 0 : i32
    return %c0_i32, %c0_i32_0 : i32, i32
  }
  func.func @transform_3(%arg0: i32) -> (i32, i32) {
    %c0_i32 = arith.constant 0 : i32
    %c0_i32_0 = arith.constant 0 : i32
    %c0_i32_1 = arith.constant 0 : i32
    return %c0_i32, %c0_i32_0 : i32, i32
  }
  func.func @transform_4(%arg0: i32) -> (i32, i32) {
    %c0_i32 = arith.constant 0 : i32
    %c0_i32_0 = arith.constant 0 : i32
    %c0_i32_1 = arith.constant 0 : i32
    return %c0_i32, %c0_i32_0 : i32, i32
  }
  func.func @transform_5(%arg0: i32) -> (i32, i32) {
    %c0_i32 = arith.constant 0 : i32
    %c0_i32_0 = arith.constant 0 : i32
    %c0_i32_1 = arith.constant 0 : i32
    return %c0_i32, %c0_i32_0 : i32, i32
  }
  func.func @transform_6(%arg0: i32) -> (i32, i32) {
    %c0_i32 = arith.constant 0 : i32
    %c0_i32_0 = arith.constant 0 : i32
    %c0_i32_1 = arith.constant 0 : i32
    return %c0_i32, %c0_i32_0 : i32, i32
  }
  func.func @transform_7(%arg0: i32) -> (i32, i32) {
    %c0_i32 = arith.constant 0 : i32
    %c0_i32_0 = arith.constant 0 : i32
    return %arg0, %c0_i32 : i32, i32
  }
}

</mosaic_0001>

<bundles_post_ra>
// kernel: net_forward.1
= control target key start
LH: loop header
LB: loop body
LE: loop exit
PB: predicated region body
PF: predicated region fallthrough
CT: control target
= control target key end

     0   :  { %12 = vsyncpa [#allocation3], 0  ;;  %s518_s24 = smov [#allocation2]   ;;  %s613_s0 = inlined_call_operand.vmem [shape: f32[8,8], index: 0, kind: input, shape index: {}]   ;;  %s614_s1 = inlined_call_operand.vmem [shape: bf16[8,192], index: 1, kind: input, shape index: {}]   ;;  %s615_s2 = inlined_call_operand.vmem [shape: f32[1,192], index: 2, kind: input, shape index: {}]   ;;  %s616_s3 = inlined_call_operand.hbm [shape: bf16[192,128], index: 3, kind: input, shape index: {}]   ;;  %s617_s4 = inlined_call_operand.vmem [shape: f32[1,128], index: 4, kind: input, shape index: {}]   ;;  %s618_s5 = inlined_call_operand.vmem [shape: bf16[128,8], index: 5, kind: input, shape index: {}]   ;;  %s619_s6 = inlined_call_operand.vmem [shape: f32[1,8], index: 6, kind: input, shape index: {}]   ;;  %s620_s7 = inlined_call_operand.vmem [shape: f32[8,8], index: 7, kind: output, shape index: {}]  }
   0x1   :  { %s24_s25 = sshll.u32 %s518_s24, 4  ;;  %s25_s25 = int_to_ptr.vmem [resolvable:$true] %s24_s25 }
   0x2   :  { %s504_s26 = scalar_lea.vmem %s25_s25, 1536  ;;  %p509_p1 = scmp.lt.s32.totalorder %s25_s25, %s25_s25 }
   0x3   :  { %p505_p0 = scmp.ne.s32.totalorder %s25_s25, %s504_s26  ;;  %p510_p2 = scmp.lt.s32.totalorder %s504_s26, %s504_s26 }
   0x5   :  { %p511_p3 = por %p510_p2, %p509_p1 }
   0x7   :  { %p512_p4 = pnand %p511_p3, %p505_p0 }
   0x9   :  { %515 = shalt.err (!%p512_p4)
}
   0xa   :  { %s519_s27 = smov 64   ;;  %s520_s28 = smov 4  }
   0xb   :  { %30 = dma.hbm_to_vmem [thread:$0]  %s616_s3, 1536, %s25_s25, [#allocation3], %s519_s27, %s519_s27, %s520_s28  }
   0xc   :  { %516 = dma.done.wait [#allocation3], 1536  }
   0xd   :  { %517 = vsyncadd [#allocation3], 4294965760  ;;  %v521_v0 = vmov 0   ;;  %v43_v1 = vld [vmem:[%s614_s1] sm:$0xff]  ;;  %vm65_vm0 = vcmask 1043456   ;;  %v466_v5 = vld [vmem:[#allocation2 + $0x38] sm:$0xff]   ;;  %v46_v23 = vlaneseq }
   0xe   :  { %104 = vmatprep.mubr.bf16.mxu0 %v521_v0  ;;  %224 = vmatprep.subr.bf16.mxu1 %v521_v0  ;;  %v41_v2 = vld [vmem:[%s613_s0] sm:$0xff]  ;;  %v403_v3 = vcombine.high %v43_v1, %v43_v1  ;;  %v402_v4 = vcombine.low %v43_v1, %v43_v1  ;;  %v467_v8 = vld [vmem:[#allocation2 + $0x30] sm:$0xff]   ;;  %vm61_vm1 = vcmask 64512   ;;  %v468_v9 = vld [vmem:[#allocation2 + $0x28] sm:$0xff]   ;;  %v522_v20 = vmov 0.0  }
   0xf   :  { %v42_v7 = vpack.c.bf16 %v41_v2, %v41_v2  ;;  %225 = vmatpush1.bf16.msra.mxu1 %v466_v5  ;;  %v469_v10 = vld [vmem:[#allocation2 + $0x20] sm:$0xff]   ;;  %v470_v11 = vld [vmem:[#allocation2 + $0x18] sm:$0xff]   ;;  %v471_v12 = vld [vmem:[#allocation2 + $0x10] sm:$0xff]   ;;  %v47_v24 = vshrl.u32 %v46_v23, 7  ;;  %vm220_vm2 = vcmask 523264   ;;  %vm523_vm3 = vmmov 0  }
  0x10   :  { %404 = vmatprep.subr.msk.bf16.mxu0 %vm65_vm0, %v403_v3  ;;  %v67_v6 = vsel %vm65_vm0, %v402_v4, 0  ;;  %226 = vmatprep.subr.bf16.mxu1 %v521_v0  ;;  %v472_v13 = vld [vmem:[#allocation2 + $0x8] sm:$0xff]   ;;  %v473_v14 = vld [vmem:[#allocation2] sm:$0xff]   ;;  %v474_v15 = vld [vmem:[#allocation2 + $0x58] sm:$0xff]   ;;  %v265_v51 = vand.u32 127, %v46_v23 }
  0x11   :  { %87 = vmatpush1.bf16.msra.mxu0 %v67_v6  ;;  %v475_v16 = vld [vmem:[#allocation2 + $0x50] sm:$0xff]   ;;  %v476_v17 = vld [vmem:[#allocation2 + $0x48] sm:$0xff]   ;;  %v477_v18 = vld [vmem:[#allocation2 + $0x40] sm:$0xff]   ;;  %v48_v25 = vsub.s32 0, %v47_v24  ;;  %v52_v27 = vsub.s32 1, %v47_v24 }
  0x12   :  { %v478_v19 = vld [vmem:[%s618_s5 + $0x38] sm:$0xff]   ;;  %438 = vmatprep.subr.bf16.mxu0 %v522_v20  ;;  %v479_v21 = vld [vmem:[%s618_s5 + $0x30] sm:$0xff]   ;;  %v480_v22 = vld [vmem:[%s618_s5 + $0x28] sm:$0xff]   ;;  %vm266_vm4 = vcmp.lt.s32.totalorder %v265_v51, 64  ;;  %vm381_vm5 = vcmp.lt.s32.totalorder %v265_v51, 5  ;;  %vm394_vm6 = vcmp.eq.s32.totalorder %v265_v51, 5 }
  0x13   :  { %227 = vmatpush1.bf16.msra.mxu1 %v467_v8  ;;  %v44_v26 = vld [vmem:[%s615_s2] sm:$0x3]  ;;  %v482_v41 = vld [vmem:[%s618_s5 + $0x18] sm:$0xff]   ;;  %v483_v42 = vld [vmem:[%s618_s5 + $0x10] sm:$0xff]  }
  0x14   :  { %405 = vmatmul.mubr.msk.bf16.vlgmr.msra.gmra.mxu0 %vm61_vm1, %v42_v7  ;;  %228 = vmatprep.subr.bf16.mxu1 %v521_v0  ;;  %v49_v28 = vrot.slane %v44_v26, %v48_v25  ;;  %v53_v29 = vrot.slane %v44_v26, %v52_v27  ;;  %v481_v40 = vld [vmem:[%s618_s5 + $0x20] sm:$0xff]   ;;  %v484_v43 = vld [vmem:[%s618_s5 + $0x8] sm:$0xff]  }
  0x15   :  { %439 = vmatpush3.bf16.msra.mxu0 %v478_v19  ;;  %v485_v44 = vld [vmem:[%s618_s5] sm:$0xff]   ;;  %454 = vmatprep.mubr.msk.bf16.mxu0 %vm523_vm3, %v522_v20 }
  0x16   :  { %440 = vmatprep.subr.bf16.mxu0 %v522_v20  ;;  %v406_v45 = vld [vmem:[%s617_s4] ss:$0 sm:$0xff] }
  0x17   :  { %229 = vmatpush1.bf16.msra.mxu1 %v468_v9  ;;  %v420_v55 = vld [vmem:[%s619_s6] ss:$0 sm:$0xff] }
  0x18   :  { %230 = vmatprep.subr.bf16.mxu1 %v521_v0 }
  0x19   :  { %441 = vmatpush3.bf16.msra.mxu0 %v479_v21 }
  0x1a   :  { %442 = vmatprep.subr.bf16.mxu0 %v522_v20 }
  0x1b   :  { %231 = vmatpush1.bf16.msra.mxu1 %v469_v10 }
  0x1c   :  { %232 = vmatprep.subr.bf16.mxu1 %v521_v0 }
  0x1d   :  { %443 = vmatpush3.bf16.msra.mxu0 %v480_v22 }
  0x1e   :  { %444 = vmatprep.subr.bf16.mxu0 %v522_v20 }
  0x1f   :  { %233 = vmatpush1.bf16.msra.mxu1 %v470_v11 }
  0x20   :  { %234 = vmatprep.subr.bf16.mxu1 %v521_v0 }
  0x21   :  { %445 = vmatpush3.bf16.msra.mxu0 %v481_v40 }
  0x22   :  { %446 = vmatprep.subr.bf16.mxu0 %v522_v20 }
  0x23   :  { %235 = vmatpush1.bf16.msra.mxu1 %v471_v12 }
  0x24   :  { %236 = vmatprep.subr.bf16.mxu1 %v521_v0 }
  0x25   :  { %447 = vmatpush3.bf16.msra.mxu0 %v482_v41 }
  0x26   :  { %448 = vmatprep.subr.bf16.mxu0 %v522_v20 }
  0x27   :  { %237 = vmatpush1.bf16.msra.mxu1 %v472_v13 }
  0x28   :  { %238 = vmatprep.subr.bf16.mxu1 %v521_v0 }
  0x29   :  { %449 = vmatpush3.bf16.msra.mxu0 %v483_v42 }
  0x2a   :  { %450 = vmatprep.subr.bf16.mxu0 %v522_v20 }
  0x2b   :  { %239 = vmatpush1.bf16.msra.mxu1 %v473_v14 }
  0x2c   :  { %248 = vmatprep.subr.bf16.mxu1 %v521_v0 }
  0x2d   :  { %451 = vmatpush3.bf16.msra.mxu0 %v484_v43 }
  0x2e   :  { %452 = vmatprep.subr.bf16.mxu0 %v522_v20 }
  0x2f   :  { %249 = vmatpush2.bf16.msra.mxu1 %v474_v15 }
  0x30   :  { %250 = vmatprep.subr.bf16.mxu1 %v521_v0 }
  0x31   :  { %453 = vmatpush3.bf16.msra.mxu0 %v485_v44 }
  0x33   :  { %251 = vmatpush2.bf16.msra.mxu1 %v475_v16 }
  0x34   :  { %252 = vmatprep.subr.bf16.mxu1 %v521_v0 }
  0x37   :  { %253 = vmatpush2.bf16.msra.mxu1 %v476_v17 }
  0x38   :  { %254 = vmatprep.subr.bf16.mxu1 %v521_v0 }
  0x3b   :  { %255 = vmatpush2.bf16.msra.mxu1 %v477_v18 }
  0xd4   :  { %v106_v30 = vpop.f32.mrf.mxu0 }
  0xd5   :  { %v107_v31 = vadd.f32 %v106_v30, %v49_v28 }
  0xd6   :  { %v108_v32 = vpop.f32.mrf.mxu0 }
  0xd7   :  { %v109_v33 = vadd.f32 %v108_v32, %v53_v29  ;;  %486 = vtanh.f32 %v107_v31 }
  0xd8   :  { %v110_v34 = vpop.f32.mrf.mxu0 }
  0xd9   :  { %488 = vtanh.f32 %v109_v33 }
  0xda   :  { %v111_v35 = vpop.f32.mrf.mxu0 }
  0xe4   :  { %v487_v36 = vpop.eup %486 }
  0xe5   :  { %v115_v39 = vpack.c.bf16 %v487_v36, %v487_v36 }
  0xe6   :  { %v489_v37 = vpop.eup %488 }
  0xe7   :  { %v116_v38 = vpack.c.bf16 %v489_v37, %v489_v37 }
  0xe9   :  { %419 = vmatprep.mubr.msk.bf16.mxu1 %vm220_vm2, %v116_v38 }
  0xea   :  { %257 = vmatmul.mubr.bf16.vlgmr.msra.gmra.mxu1 %v115_v39 }
 0x1aa   :  { %v258_v46 = vpop.f32.mrf.mxu1 }
 0x1ab   :  { %v259_v47 = vadd.f32 %v406_v45, %v258_v46 }
 0x1ac   :  { %v260_v48 = vpop.f32.mrf.mxu1 }
 0x1ad   :  { %490 = vtanh.f32 %v259_v47 }
 0x1ae   :  { %v261_v49 = vpop.f32.mrf.mxu1 }
 0x1b0   :  { %v262_v50 = vpop.f32.mrf.mxu1 }
 0x1ba   :  { %v491_v52 = vpop.eup %490 }
 0x1bb   :  { %v268_v53 = vsel %vm266_vm4, %v491_v52, %v259_v47 }
 0x1bc   :  { %v269_v54 = vpack.c.bf16 %v268_v53, %v268_v53 }
 0x1be   :  { %455 = vmatmul.mubr.bf16.vlgmr.msra.gmra.mxu0 %v269_v54 }
 0x27e   :  { %v375_v56 = vpop.f32.mrf.mxu0 }
 0x27f   :  { %v376_v57 = vadd.f32 %v420_v55, %v375_v56 }
 0x280   :  { %v456_v58 = vpop.f32.mrf.mxu0 }
 0x281   :  { %v382_v59 = vsel %vm381_vm5, %v376_v57, -1e+30 }
 0x282   :  { %v378_v60 = vpop.f32.mrf.mxu0  ;;  %v383_v61 = vsel %vm61_vm1, %v382_v59, -inf }
 0x283   :  { %384 = vmax.xlane.f32.xlu0 %v383_v61 }
 0x284   :  { %v457_v62 = vpop.f32.mrf.mxu0 }
 0x30c   :  { %v385_v63 = vpop.xlane.xlu0 %384 }
 0x30d   :  { %v386_v0 = vsub.f32 %v382_v59, %v385_v63 }
 0x30f   :  { %v387_v1 = vmul.f32 1.442695, %v386_v0 }
 0x311   :  { %492 = vpow2.f32 %v387_v1 }
 0x31e   :  { %v493_v2 = vpop.eup %492 }
 0x31f   :  { %v389_v3 = vsel %vm61_vm1, %v493_v2, 0.0 }
 0x320   :  { %390 = vadd.xlane.f32.xlu0 %v389_v3 }
 0x3a9   :  { %v391_v4 = vpop.xlane.xlu0 %390 }
 0x3aa   :  { %494 = vrcp.f32 %v391_v4 }
 0x3b7   :  { %v495_v5 = vpop.eup %494 }
 0x3b8   :  { %v393_v6 = vmul.f32 %v495_v5, %v493_v2 }
 0x3ba   :  { %v395_v7 = vsel %vm394_vm6, %v376_v57, %v393_v6 }
 0x3bb   :  { %396 = vst.msk [vmem:[%s620_s7] sm:$0xff] %vm61_vm1, %v395_v7 }
 0x3bc   :  { %401 = vsyncpa [#allocation3], 1 }

</bundles_post_ra>
